<compile_context>
chip_gen: v6e
topology: v6e:2x2x1
jax: 0.10.0
libtpu: 0.0.40
codegen_flags: <defaults>
</compile_context>

<pallas_src>
import functools

import jax
import jax.numpy as jnp
import numpy as np
from jax.experimental import pallas as pl
from jax.experimental.pallas import tpu as pltpu


def _mlp_kernel(f_ref, w1_ref, b1_ref, w2_ref, b2_ref, h_ref):
    """Two 1x1 convs + bias + ReLU on a (c_in, tm) point tile (channel-major)."""
    f = f_ref[0]                                           # (c_in, tm)
    h = jnp.dot(w1_ref[...], f, preferred_element_type=jnp.float32) + b1_ref[...]
    h = jnp.maximum(h, 0.0)
    h = jnp.dot(w2_ref[...], h, preferred_element_type=jnp.float32) + b2_ref[...]
    h_ref[0] = jnp.maximum(h, 0.0)                         # (c_out, tm)


def _group_max_kernel(qxyz_ref, nxyz_ref, h_ref, tri_ref, out_ref,
                      *, tk, k, radius2, n_chunks):
    """Ball query (first-k-by-index within radius) + grouped max aggregation."""
    q = qxyz_ref[0]                                        # (tm, 3)
    qx = q[:, 0:1]
    qy = q[:, 1:2]
    qz = q[:, 2:3]                                         # (tm, 1) each
    tri = tri_ref[...]                                     # (tk, tk) bf16, tri[i,j]=1 iff i<=j

    c_out = out_ref.shape[1]
    tm = out_ref.shape[2]
    neg = jnp.float32(-3.4e38)

    def body(c, carry):
        acc, cnt = carry                                   # (c_out, tm) f32, (tm, 1) f32
        start = pl.multiple_of(c * tk, tk)

        # lane-dense per-coordinate squared distance, (tm, tk)
        nbr = nxyz_ref[0, :, pl.ds(start, tk)]             # (3, tk)
        dx = qx - nbr[0:1, :]
        dy = qy - nbr[1:2, :]
        dz = qz - nbr[2:3, :]
        d2 = dx * dx + dy * dy + dz * dz
        in_ball = d2 < radius2                             # (tm, tk) bool

        # inclusive prefix count along neighbor index (bf16 MXU, exact 0/1 inputs)
        rank = cnt + jnp.dot(in_ball.astype(jnp.bfloat16), tri,
                             preferred_element_type=jnp.float32)   # (tm, tk)
        sel = jnp.logical_and(in_ball, rank <= float(k))

        # running masked max over this neighbor chunk
        h_chunk = h_ref[0, :, pl.ds(start, tk)]            # (c_out, tk)
        vals = jnp.where(sel[None, :, :], h_chunk[:, None, :], neg)  # (c_out, tm, tk)
        acc = jnp.maximum(acc, jnp.max(vals, axis=-1))     # (c_out, tm)

        cnt = rank[:, tk - 1:tk]                           # running inclusive count
        return acc, cnt

    acc0 = jnp.full((c_out, tm), neg, jnp.float32)
    cnt0 = jnp.zeros((tm, 1), jnp.float32)
    acc, _ = jax.lax.fori_loop(0, n_chunks, body, (acc0, cnt0),
                               unroll=n_chunks <= 8)
    out_ref[0] = acc                                       # lane-dense (c_out, tm) store


def pointnet_sa_forward(xyz, feats, params, *, k=16, radius=0.4, tm=128, tk=128):
    """xyz: (bs, n, 3) f32; feats: (bs, c_in, n) f32 (PyTorch NCW).

    Returns (child_xyz (bs, n, 3), child_feats (bs, c_out, n) NCW)."""
    bs, n, _ = xyz.shape
    c_in = feats.shape[1]
    w1, b1, w2, b2 = params                                # w: (c_out, c_in)-style NCW weights
    c_out = w1.shape[0]
    assert n % tm == 0 and n % tk == 0, "TODO(synk): pad ragged n"

    # ---- stage 1: pointwise 2-layer MLP, h kept channel-major (bs, c_out, n) ----
    h = pl.pallas_call(
        _mlp_kernel,
        out_shape=jax.ShapeDtypeStruct((bs, c_out, n), jnp.float32),
        grid=(bs, n // tm),
        in_specs=[
            pl.BlockSpec((1, c_in, tm), lambda b, q: (b, 0, q)),
            pl.BlockSpec((c_out, c_in), lambda b, q: (0, 0)),
            pl.BlockSpec((c_out, 1), lambda b, q: (0, 0)),
            pl.BlockSpec((c_out, c_out), lambda b, q: (0, 0)),
            pl.BlockSpec((c_out, 1), lambda b, q: (0, 0)),
        ],
        out_specs=pl.BlockSpec((1, c_out, tm), lambda b, q: (b, 0, q)),
        compiler_params=pltpu.CompilerParams(
            dimension_semantics=("parallel", "parallel")),
    )(feats, w1, b1, w2, b2)

    # ---- stage 2: ball query + grouped max over neighbor chunks ----
    xyz_t = jnp.transpose(xyz, (0, 2, 1))                  # (bs, 3, n) coord-major (tiny)
    tri = jnp.triu(jnp.ones((tk, tk), jnp.bfloat16))       # T[i,j] = 1 iff i <= j

    kernel = functools.partial(_group_max_kernel, tk=tk, k=k,
                               radius2=float(radius) ** 2, n_chunks=n // tk)
    child_feats = pl.pallas_call(
        kernel,
        out_shape=jax.ShapeDtypeStruct((bs, c_out, n), jnp.float32),
        grid=(bs, n // tm),
        in_specs=[
            pl.BlockSpec((1, tm, 3), lambda b, q: (b, q, 0)),    # query xyz tile
            pl.BlockSpec((1, 3, n), lambda b, q: (b, 0, 0)),     # neighbor xyz (resident per batch)
            pl.BlockSpec((1, c_out, n), lambda b, q: (b, 0, 0)), # MLP features (resident per batch)
            pl.BlockSpec((tk, tk), lambda b, q: (0, 0)),         # prefix-count triangle (bf16)
        ],
        out_specs=pl.BlockSpec((1, c_out, tm), lambda b, q: (b, 0, q)),
        compiler_params=pltpu.CompilerParams(
            dimension_semantics=("parallel", "parallel")),
    )(xyz, xyz_t, h, tri)

    return xyz, child_feats


def reference_forward(xyz, feats, params, *, k=16, radius=0.4):
    """Pure-JAX reference with identical semantics (NCW in / NCW out)."""
    w1, b1, w2, b2 = params
    h = jnp.maximum(jnp.einsum("oc,bcn->bon", w1, feats) + b1[None], 0.0)
    h = jnp.maximum(jnp.einsum("oc,bcn->bon", w2, h) + b2[None], 0.0)   # (bs, c_out, n)
    diff = xyz[:, :, None, :] - xyz[:, None, :, :]
    d2 = jnp.sum(diff * diff, axis=-1)                     # (bs, m, n)
    in_ball = d2 < float(radius) ** 2
    rank = jnp.cumsum(in_ball.astype(jnp.int32), axis=-1)
    sel = in_ball & (rank <= k)
    vals = jnp.where(sel[:, None, :, :], h[:, :, None, :], jnp.float32(-3.4e38))
    out = jnp.max(vals, axis=-1)                           # (bs, c_out, m)
    return xyz, out


if __name__ == "__main__":
    bs, n = 2, 256
    in_dim, out_dim = 8, 32
    k_neighbors, radius = 16, 0.4

    key = jax.random.PRNGKey(0)
    kx, kf, k1, k2, k3, k4 = jax.random.split(key, 6)
    xyz = jax.random.uniform(kx, (bs, n, 3), dtype=jnp.float32)
    feats = jax.random.normal(kf, (bs, in_dim, n), dtype=jnp.float32)

    # Conv1d (kernel size 1) weights in PyTorch layout: (out, in), bias as column.
    w1 = jax.random.normal(k1, (out_dim, in_dim), dtype=jnp.float32) * 0.2
    b1 = jax.random.normal(k2, (out_dim, 1), dtype=jnp.float32) * 0.1
    w2 = jax.random.normal(k3, (out_dim, out_dim), dtype=jnp.float32) * 0.2
    b2 = jax.random.normal(k4, (out_dim, 1), dtype=jnp.float32) * 0.1
    params = (w1, b1, w2, b2)

    child_xyz, child_feats = pointnet_sa_forward(
        xyz, feats, params, k=k_neighbors, radius=radius)
    jax.block_until_ready(child_feats)

    ref_xyz, ref_feats = reference_forward(
        xyz, feats, params, k=k_neighbors, radius=radius)

    assert child_xyz.shape == (bs, n, 3)
    assert child_feats.shape == (bs, out_dim, n)
    np.testing.assert_allclose(np.asarray(child_feats), np.asarray(ref_feats),
                               rtol=2e-3, atol=2e-3)
    print("KERNEL_OK")
</pallas_src>

<mosaic_0001>
module attributes {stable_mosaic.version = 11 : i64} {
  func.func @_mlp_kernel(%arg0: i32, %arg1: i32, %arg2: memref<1x8x128xf32, #tpu.memory_space<vmem>>, %arg3: memref<32x8xf32, #tpu.memory_space<vmem>>, %arg4: memref<32x1xf32, #tpu.memory_space<vmem>>, %arg5: memref<32x32xf32, #tpu.memory_space<vmem>>, %arg6: memref<32x1xf32, #tpu.memory_space<vmem>>, %arg7: memref<1x32x128xf32, #tpu.memory_space<vmem>>) attributes {dimension_semantics = [#tpu.dimension_semantics<parallel>, #tpu.dimension_semantics<parallel>], iteration_bounds = array<i64: 2, 2>, scalar_prefetch = 0 : i64, scratch_operands = 0 : i64, tpu.core_type = #tpu.core_type<tc>, window_params = [{transform_indices = @transform_0, window_bounds = array<i64: 1, 8, 128>}, {pipeline_mode = #tpu.pipeline_mode<synchronous>, transform_indices = @transform_1, window_bounds = array<i64: 32, 8>}, {pipeline_mode = #tpu.pipeline_mode<synchronous>, transform_indices = @transform_2, window_bounds = array<i64: 32, 1>}, {pipeline_mode = #tpu.pipeline_mode<synchronous>, transform_indices = @transform_3, window_bounds = array<i64: 32, 32>}, {pipeline_mode = #tpu.pipeline_mode<synchronous>, transform_indices = @transform_4, window_bounds = array<i64: 32, 1>}, {transform_indices = @transform_5, window_bounds = array<i64: 1, 32, 128>}]} {
    %c0 = arith.constant 0 : index
    %c0_0 = arith.constant 0 : index
    %c0_1 = arith.constant 0 : index
    %0 = vector.load %arg2[%c0, %c0_0, %c0_1] : memref<1x8x128xf32, #tpu.memory_space<vmem>>, vector<1x8x128xf32>
    %1 = vector.shape_cast %0 : vector<1x8x128xf32> to vector<8x128xf32>
    %c0_2 = arith.constant 0 : index
    %c0_3 = arith.constant 0 : index
    %2 = vector.load %arg3[%c0_2, %c0_3] : memref<32x8xf32, #tpu.memory_space<vmem>>, vector<32x8xf32>
    %cst = arith.constant dense<0.000000e+00> : vector<32x128xf32>
    %3 = tpu.matmul %2, %1, %cst {dimension_numbers = #tpu.dot_dimension_numbers<[1], [0], [0], [1], [0, 0, 1, 1], [], []>} : vector<32x8xf32>, vector<8x128xf32>, vector<32x128xf32> -> vector<32x128xf32>
    %c0_4 = arith.constant 0 : index
    %c0_5 = arith.constant 0 : index
    %4 = vector.load %arg4[%c0_4, %c0_5] : memref<32x1xf32, #tpu.memory_space<vmem>>, vector<32x1xf32>
    %5 = vector.broadcast %4 : vector<32x1xf32> to vector<32x128xf32>
    %6 = arith.addf %3, %5 : vector<32x128xf32>
    %cst_6 = arith.constant 0.000000e+00 : f32
    %7 = vector.broadcast %cst_6 : f32 to vector<32x128xf32>
    %8 = arith.maximumf %6, %7 : vector<32x128xf32>
    %c0_7 = arith.constant 0 : index
    %c0_8 = arith.constant 0 : index
    %9 = vector.load %arg5[%c0_7, %c0_8] : memref<32x32xf32, #tpu.memory_space<vmem>>, vector<32x32xf32>
    %cst_9 = arith.constant dense<0.000000e+00> : vector<32x128xf32>
    %10 = tpu.matmul %9, %8, %cst_9 {dimension_numbers = #tpu.dot_dimension_numbers<[1], [0], [0], [1], [0, 0, 1, 1], [], []>} : vector<32x32xf32>, vector<32x128xf32>, vector<32x128xf32> -> vector<32x128xf32>
    %c0_10 = arith.constant 0 : index
    %c0_11 = arith.constant 0 : index
    %11 = vector.load %arg6[%c0_10, %c0_11] : memref<32x1xf32, #tpu.memory_space<vmem>>, vector<32x1xf32>
    %12 = vector.broadcast %11 : vector<32x1xf32> to vector<32x128xf32>
    %13 = arith.addf %10, %12 : vector<32x128xf32>
    %cst_12 = arith.constant 0.000000e+00 : f32
    %14 = vector.broadcast %cst_12 : f32 to vector<32x128xf32>
    %15 = arith.maximumf %13, %14 : vector<32x128xf32>
    %c0_13 = arith.constant 0 : index
    %c0_14 = arith.constant 0 : index
    %c0_15 = arith.constant 0 : index
    %16 = vector.load %arg7[%c0_13, %c0_14, %c0_15] : memref<1x32x128xf32, #tpu.memory_space<vmem>>, vector<1x32x128xf32>
    %17 = vector.shape_cast %16 : vector<1x32x128xf32> to vector<32x128xf32>
    %18 = vector.shape_cast %15 : vector<32x128xf32> to vector<1x32x128xf32>
    tpu.vector_store %arg7[%c0_13, %c0_14, %c0_15], %18 {strides = array<i32>} : memref<1x32x128xf32, #tpu.memory_space<vmem>>, vector<1x32x128xf32>,
    return
  }
  func.func @transform_0(%arg0: i32, %arg1: i32) -> (i32, i32, i32) {
    %c0_i32 = arith.constant 0 : i32
    %c0_i32_0 = arith.constant 0 : i32
    return %arg0, %c0_i32, %arg1 : i32, i32, i32
  }
  func.func @transform_1(%arg0: i32, %arg1: i32) -> (i32, i32) {
    %c0_i32 = arith.constant 0 : i32
    %c0_i32_0 = arith.constant 0 : i32
    %c0_i32_1 = arith.constant 0 : i32
    return %c0_i32, %c0_i32_0 : i32, i32
  }
  func.func @transform_2(%arg0: i32, %arg1: i32) -> (i32, i32) {
    %c0_i32 = arith.constant 0 : i32
    %c0_i32_0 = arith.constant 0 : i32
    %c0_i32_1 = arith.constant 0 : i32
    return %c0_i32, %c0_i32_0 : i32, i32
  }
  func.func @transform_3(%arg0: i32, %arg1: i32) -> (i32, i32) {
    %c0_i32 = arith.constant 0 : i32
    %c0_i32_0 = arith.constant 0 : i32
    %c0_i32_1 = arith.constant 0 : i32
    return %c0_i32, %c0_i32_0 : i32, i32
  }
  func.func @transform_4(%arg0: i32, %arg1: i32) -> (i32, i32) {
    %c0_i32 = arith.constant 0 : i32
    %c0_i32_0 = arith.constant 0 : i32
    %c0_i32_1 = arith.constant 0 : i32
    return %c0_i32, %c0_i32_0 : i32, i32
  }
  func.func @transform_5(%arg0: i32, %arg1: i32) -> (i32, i32, i32) {
    %c0_i32 = arith.constant 0 : i32
    %c0_i32_0 = arith.constant 0 : i32
    return %arg0, %c0_i32, %arg1 : i32, i32, i32
  }
}

</mosaic_0001>

<bundles_post_ra>
// kernel: tpu_custom_call.1
= control target key start
LH: loop header
LB: loop body
LE: loop exit
PB: predicated region body
PF: predicated region fallthrough
CT: control target
= control target key end

     0   :  { %10 = vsyncpa [#allocation3], 0  ;;  %s1074_s0 = inlined_call_operand.vmem [shape: f32[2,8,256], index: 0, kind: input, shape index: {}]   ;;  %s1075_s1 = inlined_call_operand.vmem [shape: f32[32,8], index: 1, kind: input, shape index: {}]   ;;  %s1076_s2 = inlined_call_operand.vmem [shape: f32[32,1], index: 2, kind: input, shape index: {}]   ;;  %s1077_s3 = inlined_call_operand.vmem [shape: f32[32,32], index: 3, kind: input, shape index: {}]   ;;  %s1078_s4 = inlined_call_operand.vmem [shape: f32[32,1], index: 4, kind: input, shape index: {}]   ;;  %s1079_s5 = inlined_call_operand.hbm [shape: f32[2,32,256], index: 5, kind: output, shape index: {}]  }
   0x1   :  { %12 = vsyncpa [#allocation3 + $0x1], 0  ;;  %s879_s18 = smov 0   ;;  %s881_s19 = smov 0  }
   0x2   :  { %s883_s20 = smov 0   ;;  %s885_s21 = smov 0  }
   0x3   :  { %s887_s22 = smov 0   ;;  %s889_s23 = smov 0  }
   0x4   :  { %s891_s24 = smov 0   ;;  %s893_s25 = smov 0  }
   0x5 LB: > { %s609_s26 = sadd.s32 4294967295, %s842_s25   ;;  %s610_s27 = sadd.s32 4294967294, %s842_s25   ;;  %s842_s25 = sphi %s893_s25, %s18_s25   ;;  %s838_s24 = sphi %s891_s24, %s1094_s24   ;;  %s834_s23 = sphi %s889_s23, %s1093_s23   ;;  %s830_s22 = sphi %s887_s22, %s1092_s22   ;;  %s826_s21 = sphi %s885_s21, %s1091_s21   ;;  %s822_s20 = sphi %s883_s20, %s1090_s20   ;;  %s818_s19 = sphi %s881_s19, %s1089_s19   ;;  %s814_s18 = sphi %s879_s18, %s1088_s18  }
   0x6   : > { %s27_s28 = sadd.s32 1, %s834_s23  ;;  %s30_s29 = sadd.s32 1, %s838_s24 }
   0x7   : > { %p28_p0 = scmp.ge.s32.totalorder %s27_s28, 2  ;;  %p161_p1 = scmp.ne.s32.totalorder %s822_s20, %s818_s19 }
   0x8   : > { %p162_p2 = scmp.eq.s32.totalorder %s609_s26, 3  ;;  %p167_p5 = scmp.ne.s32.totalorder %s818_s19, %s814_s18 }
   0x9   : > { %s1096_s28 = smov (%p28_p0, %s27_s28), 0  ;;  %s1098_s29 = smov (!%p28_p0, %s30_s29), %s838_s24 }
   0xa   : > { %1082 = sst [smem:[#allocation5_spill]] %s1096_s28  ;;  %s147_s30 = ssub.s32 %s834_s23, %s1096_s28 }
   0xb   : > { %p930_p3 = por %p162_p2, %p161_p1  ;;  %p32_p4 = scmp.ge.s32.totalorder %s1098_s29, 2 }
   0xc   : > { %p168_p6 = scmp.eq.s32.totalorder %s610_s27, 3  ;;  %p613_p7 = scmp.ge.s32.totalorder %s842_s25, 1 }
   0xd   : > { %s1100_s29 = smov (%p32_p4, %s1098_s29), 0  ;;  %p209_p9 = scmp.lt.s32.totalorder %s842_s25, 5 }
   0xe   : > { %1084 = sst [smem:[#allocation6_spill]] %s1100_s29  ;;  %p939_p8 = por %p168_p6, %p167_p5 }
   0xf   : > { %s146_s8 = ssub.s32 %s838_s24, %s1100_s29  ;;  %s151_s9 = sadd.s32 1, %s822_s20 }
  0x10   : > { %s148_s10 = sor.u32 %s147_s30, %s146_s8  ;;  %p210_p10 = pnand %p613_p7, %p209_p9 }
  0x11   : > { %p149_p11 = scmp.eq.s32.totalorder %s148_s10, 0  ;;  %p240_p12 = scmp.lt.s32.totalorder (!%p210_p10), %s830_s22, 1 }
  0x12   : > { %213 = sbr.rel (%p210_p10) target bundleno = 455 (0x1c7), region = 40  ;;  %p242_p13 = scmp.lt.s32.totalorder (!%p210_p10), %s826_s21, 1 }
  0x13   : > { %s948_s11 = scalar_select %p149_p11, %s822_s20, %s151_s9  }
  0x14   : > { %s626_s12 = sshll.u32 (!%p210_p10), %s830_s22, 3  ;;  %s845_s9 = smov (!%p210_p10), [#allocation2]  }
  0x15   : > { %s754_s10 = sshll.u32 (!%p210_p10), %s845_s9, 4  ;;  %s755_s10 = int_to_ptr.vmem [resolvable:$false] %s754_s10 }
  0x17   : > { %v249_v0 = vld [vmem:[%s1075_s1] sm:$0xff]  ;;  %vm277_vm0 = vcmask 64512   ;;  %v256_v1 = vld [vmem:[%s1076_s2 + $0x18] sm:$0xff]  ;;  %s241_s16 = scalar_select %p240_p12, %s830_s22, 1  ;;  %v844_v2 = vmov 0   ;;  %v254_v3 = vld [vmem:[%s1076_s2 + $0x8] sm:$0xff] }
  0x18   : > { %645 = vmatprep.mubr.msk.f32.mxu0 %vm277_vm0, %v249_v0  ;;  %748 = vset.pattern.permute.xlu0 %v844_v2  ;;  %s243_s27 = scalar_select %p242_p13, %s826_s21, 1  ;;  %v255_v4 = vld [vmem:[%s1076_s2 + $0x10] sm:$0xff]  ;;  %v253_v5 = vld [vmem:[%s1076_s2] sm:$0xff]  ;;  %v250_v7 = vld [vmem:[%s1075_s1 + $0x8] sm:$0xff]  ;;  %vm407_vm1 = vcmask 261120  }
  0x19   : > { %749 = vset.pattern.permute.xlu1 %v844_v2  ;;  %274 = vperm.xlu0 %748, %v256_v1   ;;  %s615_s30 = sshll.u32 %s241_s16, 1  ;;  %v383_v8 = vld [vmem:[%s1078_s4] sm:$0xff]  ;;  %v251_v9 = vld [vmem:[%s1075_s1 + $0x10] sm:$0xff]  ;;  %v384_v10 = vld [vmem:[%s1078_s4 + $0x8] sm:$0xff] }
  0x1a   : > { %264 = vperm.xlu1 %749, %v254_v3   ;;  %s245_s13 = sadd.s32 %s615_s30, %s243_s27  ;;  %v252_v11 = vld [vmem:[%s1075_s1 + $0x18] sm:$0xff]  ;;  %v385_v12 = vld [vmem:[%s1078_s4 + $0x10] sm:$0xff]  ;;  %v379_v14 = vld [vmem:[%s1077_s3] sm:$0xff]  ;;  %s756_s27 = scalar_lea.vmem %s755_s10, 1024 }
  0x1b   : > { %s616_s14 = sshll.u32 %s245_s13, 3  ;;  %v386_v13 = vld [vmem:[%s1078_s4 + $0x18] sm:$0xff]  ;;  %v381_v15 = vld [vmem:[%s1077_s3 + $0x10] sm:$0xff]  ;;  %v380_v32 = vld [vmem:[%s1077_s3 + $0x8] sm:$0xff]  ;;  %s525_s13 = sadd.s32 %s826_s21, %s626_s12 }
  0x1c   : > { %s247_s28 = scalar_lea.vmem %s1074_s0, %s616_s14  ;;  %662 = vmatprep.mubr.msk.f32.mxu1 %vm407_vm1, %v381_v15  ;;  %v382_v33 = vld [vmem:[%s1077_s3 + $0x18] sm:$0xff]  ;;  %s627_s17 = sshll.u32 %s525_s13, 7 }
  0x1d   : > { %269 = vperm.xlu0 %748, %v255_v4   ;;  %v248_v6 = vld [vmem:[%s247_s28] sm:$0xff]  ;;  %s237_s28 = sand.u32 1, %s818_s19   ;;  %s1021_s26 = scalar_lea.hbm %s1079_s5, %s627_s17 }
  0x1e   : > { %259 = vperm.xlu1 %749, %v253_v5   ;;  %643 = vmatprep.subr.mxu0 %v248_v6  ;;  %s614_s29 = sshll.u32 %s237_s28, 5  ;;  %s1023_s16 = scalar_lea.sflag [#allocation3], %s237_s28 }
  0x1f   : > { %644 = vmatpush3.msra.mxu0 %v248_v6  ;;  %s239_s14 = scalar_lea.vmem [#allocation2], %s614_s29 }
  0x20   : > { %646 = vmatmul.mubr.msk.f32.vlgmr.msra.gmra.mxu0 %vm277_vm0, %v250_v7  ;;  %s528_s15 = sshll.u32 %s239_s14, 4  ;;  %s1016_s15 = int_to_ptr.vmem [resolvable:$true] %s528_s15 }
  0x21   : > { %389 = vperm.xlu0 %748, %v383_v8   ;;  %648 = vmatprep.mubr.msk.f32.mxu0 %vm277_vm0, %v251_v9  ;;  %s750_s8 = scalar_lea.vmem %s1016_s15, 512  ;;  %p757_p4 = scmp.lt.s32.totalorder %s1016_s15, %s755_s10 }
  0x22   : > { %394 = vperm.xlu1 %749, %v384_v10   ;;  %p751_p0 = scmp.ne.s32.totalorder %s1016_s15, %s750_s8  ;;  %p758_p5 = scmp.lt.s32.totalorder %s756_s27, %s750_s8 }
  0x24   : > { %649 = vmatmul.mubr.msk.f32.gmra.mxu0 %vm277_vm0, %v252_v11  ;;  %p752_p1 = pnand %p751_p0, %p930_p3  ;;  %p759_p6 = por %p758_p5, %p757_p4 }
  0x25   : > { %399 = vperm.xlu0 %748, %v385_v12   ;;  %659 = vmatprep.mubr.msk.f32.mxu0 %vm407_vm1, %v379_v14 }
  0x26   : > { %404 = vperm.xlu1 %749, %v386_v13   ;;  %p753_p2 = pneg %p752_p1 }
  0x28   : > { %p760_p7 = pnand %p759_p6, %p753_p2 }
  0x94   : > { %v275_v16 = vpop.permute.xlu0 %274 }
  0x95   : > { %v265_v18 = vpop.permute.xlu1 %264 }
  0x98   : > { %v270_v22 = vpop.permute.xlu0 %269 }
  0x99   : > { %v260_v27 = vpop.permute.xlu1 %259 }
  0x9c   : > { %v390_v35 = vpop.permute.xlu0 %389 }
  0x9d   : > { %v395_v34 = vpop.permute.xlu1 %394 }
  0xa0   : > { %v400_v39 = vpop.permute.xlu0 %399 }
  0xa1   : > { %v405_v36 = vpop.permute.xlu1 %404 }
  0xe0   : > { %v647_v17 = vpop.f32.mrf.mxu0 }
  0xe1   : > { %v362_v24 = vadd.f32 %v647_v17, %v265_v18 }
  0xe2   : > { %v356_v19 = vpop.f32.mrf.mxu0 }
  0xe3   : > { %v357_v28 = vadd.f32 %v356_v19, %v260_v27  ;;  %v376_v30 = vmax.f32 %v362_v24, 0.0 }
  0xe4   : > { %v650_v20 = vpop.f32.mrf.mxu0 }
  0xe5   : > { %v372_v21 = vadd.f32 %v650_v20, %v275_v16  ;;  %v375_v31 = vmax.f32 %v357_v28, 0.0 }
  0xe6   : > { %v366_v23 = vpop.f32.mrf.mxu0 }
  0xe7   : > { %v378_v25 = vmax.f32 %v372_v21, 0.0  ;;  %v367_v26 = vadd.f32 %v366_v23, %v270_v22 }
  0xe9   : > { %v377_v29 = vmax.f32 %v367_v26, 0.0  ;;  %651 = vmatprep.subr.mxu0 %v378_v25  ;;  %665 = vmatprep.subr.mxu1 %v378_v25 }
  0xea   : > { %652 = vmatpush3.msra.mxu0 %v378_v25  ;;  %669 = vmatpush3.msra.mxu1 %v378_v25 }
  0xeb   : > { %653 = vmatprep.subr.mxu0 %v377_v29  ;;  %666 = vmatprep.subr.mxu1 %v377_v29 }
  0xec   : > { %654 = vmatpush3.msra.mxu0 %v377_v29  ;;  %670 = vmatpush3.msra.mxu1 %v377_v29 }
  0xed   : > { %655 = vmatprep.subr.mxu0 %v376_v30  ;;  %667 = vmatprep.subr.mxu1 %v376_v30 }
  0xee   : > { %656 = vmatpush3.msra.mxu0 %v376_v30  ;;  %671 = vmatpush3.msra.mxu1 %v376_v30 }
  0xef   : > { %657 = vmatprep.subr.mxu0 %v375_v31  ;;  %668 = vmatprep.subr.mxu1 %v375_v31 }
  0xf0   : > { %658 = vmatpush3.msra.mxu0 %v375_v31  ;;  %672 = vmatpush3.msra.mxu1 %v375_v31 }
  0xf1   : > { %660 = vmatmul.mubr.msk.f32.vlgmr.msra.gmra.mxu0 %vm407_vm1, %v380_v32  ;;  %663 = vmatmul.mubr.msk.f32.vlgmr.msra.gmra.mxu1 %vm407_vm1, %v382_v33 }
 0x1b1   : > { %v661_v37 = vpop.f32.mrf.mxu0  ;;  %v664_v38 = vpop.f32.mrf.mxu1 }
 0x1b2   : > { %v492_v40 = vadd.f32 %v661_v37, %v395_v34  ;;  %v502_v41 = vadd.f32 %v664_v38, %v405_v36 }
 0x1b3   : > { %v486_v42 = vpop.f32.mrf.mxu0  ;;  %v496_v43 = vpop.f32.mrf.mxu1 }
 0x1b4   : > { %v506_v44 = vmax.f32 %v492_v40, 0.0  ;;  %v508_v45 = vmax.f32 %v502_v41, 0.0  ;;  %v487_v46 = vadd.f32 %v486_v42, %v390_v35  ;;  %v497_v47 = vadd.f32 %v496_v43, %v400_v39 }
 0x1b6   : > { %510 = vst [vmem:[%s239_s14 + $0x8] sm:$0xff] %v506_v44  ;;  %512 = vst [vmem:[%s239_s14 + $0x18] sm:$0xff] %v508_v45  ;;  %v505_v48 = vmax.f32 %v487_v46, 0.0  ;;  %v507_v49 = vmax.f32 %v497_v47, 0.0 }
 0x1b8   : > { %509 = vst [vmem:[%s239_s14] sm:$0xff] %v505_v48  ;;  %511 = vst [vmem:[%s239_s14 + $0x10] sm:$0xff] %v507_v49 }
 0x1b9   : > { %763 = shalt.err (!%p760_p7)
}
 0x1ba   : > { %s764_s30 = scalar_lea.hbm %s1021_s26, 512  ;;  %s768_s12 = scalar_lea.hbm %s1079_s5, 2048 }
 0x1bb   : > { %p765_p9 = scmp.ne.s32.totalorder %s1021_s26, %s764_s30  ;;  %p769_p12 = scmp.lt.s32.totalorder %s1021_s26, %s1079_s5 }
 0x1bc   : > { %p770_p13 = scmp.lt.s32.totalorder %s768_s12, %s764_s30 }
 0x1bd   : > { %p766_p10 = pnand %p765_p9, %p930_p3 }
 0x1be   : > { %p771_p0 = por %p770_p13, %p769_p12 }
 0x1bf   : > { %p767_p11 = pneg %p766_p10 }
 0x1c1   : > { %p772_p1 = pnand %p771_p0, %p767_p11 }
 0x1c3   : > { %775 = shalt.err (!%p772_p1)
}
 0x1c4   : > { %s846_s17 = smov 128   ;;  %s847_s21 = smov 256  }
 0x1c5   : > { %s848_s22 = smov 8  }
 0x1c6   : > { %673 = dma.vmem_to_hbm [thread:$0]  (%p930_p3), %s1016_s15, 512, %s1021_s26, %s1023_s16, %s846_s17, %s847_s21, %s848_s22  }
 0x1c7 PF: > { %p679_p2 = scmp.ge.s32.totalorder %s842_s25, 2  ;;  %s543_s8 = sand.u32 1, %s814_s18  }
 0x1c8   : > { %s544_s9 = scalar_lea.sflag [#allocation3], %s543_s8 }
 0x1c9   : > { %p676_p4 = pnand %p679_p2, %p939_p8 }
 0x1cb   : > { %p677_p5 = pneg %p676_p4 }
 0x1cd   : > { %809 = dma.done.wait (%p677_p5), %s544_s9, 512  }
 0x1ce   : > { %811 = vsyncadd (%p677_p5), %s544_s9, 4294966784  ;;  %s18_s25 = sadd.s32 1, %s842_s25   ;;  %s1086_s6 = sld [smem:[#allocation5_spill]] }
 0x1cf   : > { %p15_p6 = scmp.ge.s32.totalorder %s18_s25, 6   ;;  %s1087_s15 = sld [smem:[#allocation6_spill]] }
 0x1d0   : > { %s1088_s18 = smov %s818_s19  ;;  %s1089_s19 = smov %s822_s20 }
 0x1d1   : > { %s1090_s20 = smov %s948_s11  ;;  %s1091_s21 = smov %s834_s23 }
 0x1d2   : > { %s1092_s22 = smov %s838_s24  ;;  %17 = sbr.rel (!%p15_p6) target bundleno = 5 (0x5), region = 75 }
 0x1d4   : > { %s1093_s23 = smov %s1086_s6 }
 0x1d5   : > { %s1094_s24 = smov %s1087_s15 }
 0x1d7   :  { %549 = vsyncpa [#allocation3], 1 }
 0x1d8   :  { %551 = vsyncpa [#allocation3 + $0x1], 1 }

</bundles_post_ra>
